<compile_context>
chip_gen: v7x
topology: tpu7x:2x2x1
jax: 0.10.0
libtpu: 0.0.40
codegen_flags: <defaults>
</compile_context>

<pallas_src>
import functools

import jax
import jax.numpy as jnp
from jax.experimental import pallas as pl
from jax.experimental.pallas import tpu as pltpu


def _round_up(x, m):
    return (x + m - 1) // m * m


def _rgcn_layer_kernel(a_ref, x_ref, w_ref, b_ref, o_ref, *, apply_relu):
    """One hetero-graph-conv layer tile: o[i] = sum_r A_r[i] @ (X @ W_r) (+ b, relu)."""
    r = pl.program_id(1)

    @pl.when(r == 0)
    def _init():
        o_ref[...] = jnp.zeros_like(o_ref)

    # X @ W_r -> [n_src_p, f_out_p] in f32 on the MXU (bf16 operands).
    # Note: with the relation axis innermost this is recomputed per dst tile; for the
    # graph sizes used here there is a single dst tile, so nothing is recomputed.
    xw = jnp.dot(x_ref[...], w_ref[...], preferred_element_type=jnp.float32)
    # A_r[i] @ (X W_r) -> [tm, f_out_p]; feed the MXU bf16 again, accumulate in f32.
    msg = jnp.dot(a_ref[...], xw.astype(a_ref.dtype), preferred_element_type=jnp.float32)
    o_ref[...] += msg

    @pl.when(r == pl.num_programs(1) - 1)
    def _finalize():
        out = o_ref[...] + b_ref[...]          # bias already summed over relations
        if apply_relu:
            out = jnp.maximum(out, 0.0)
        o_ref[...] = out


def rgcn_layer(a_norm, x, w, b, *, apply_relu):
    """a_norm: [R, N_dst, N_src], x: [N_src, F_in], w: [R, F_in, F_out], b: [R, F_out]."""
    R, n_dst, n_src = a_norm.shape
    f_in, f_out = w.shape[1], w.shape[2]

    # Lane-dense / MXU-friendly padded sizes.
    n_src_p = _round_up(n_src, 128)
    f_in_p = _round_up(f_in, 128)
    f_out_p = _round_up(f_out, 128)
    # dst-row tile: big enough to amortize per-step overhead, multiple of 8 sublanes.
    tm = 256 if n_dst > 256 else _round_up(n_dst, 8)
    n_dst_p = _round_up(n_dst, tm)

    # Zero-pad and cast operands to bf16 (padding columns/rows of A/X/W are zero, so they
    # contribute nothing; padded output rows/cols are sliced off below).
    a_p = jnp.pad(a_norm, ((0, 0), (0, n_dst_p - n_dst), (0, n_src_p - n_src))).astype(jnp.bfloat16)
    x_p = jnp.pad(x, ((0, n_src_p - n_src), (0, f_in_p - f_in))).astype(jnp.bfloat16)
    w_p = jnp.pad(w, ((0, 0), (0, f_in_p - f_in), (0, f_out_p - f_out))).astype(jnp.bfloat16)
    # Bias summed over relations once, padded, kept in f32 (added to the f32 accumulator).
    b_sum = jnp.pad(b.sum(axis=0).astype(jnp.float32), (0, f_out_p - f_out)).reshape(1, f_out_p)

    grid = (n_dst_p // tm, R)
    kernel = functools.partial(_rgcn_layer_kernel, apply_relu=apply_relu)

    out = pl.pallas_call(
        kernel,
        out_shape=jax.ShapeDtypeStruct((n_dst_p, f_out_p), jnp.float32),
        grid_spec=pltpu.PrefetchScalarGridSpec(
            num_scalar_prefetch=0,
            grid=grid,
            in_specs=[
                # A_r dst-row tile; leading relation dim squeezed out of the kernel view.
                pl.BlockSpec((None, tm, n_src_p), lambda i, r: (r, i, 0)),
                # X: resident across the whole grid (constant index map).
                pl.BlockSpec((n_src_p, f_in_p), lambda i, r: (0, 0)),
                # W_r: per-relation weight, relation dim squeezed.
                pl.BlockSpec((None, f_in_p, f_out_p), lambda i, r: (r, 0, 0)),
                # Pre-summed bias: resident.
                pl.BlockSpec((1, f_out_p), lambda i, r: (0, 0)),
            ],
            # Same output block for every r (innermost axis) -> f32 output is the accumulator.
            out_specs=pl.BlockSpec((tm, f_out_p), lambda i, r: (i, 0)),
        ),
        compiler_params=pltpu.CompilerParams(
            dimension_semantics=("parallel", "arbitrary"),
            vmem_limit_bytes=48 * 1024 * 1024,
        ),
    )(a_p, x_p, w_p, b_sum)

    return out[:n_dst, :f_out]


def normalize_adj(adj):
    """DGL GraphConv norm='both' on a dense [R, N_dst, N_src] relation adjacency.

    DGL clamps degrees to min=1 (clamp(min=1)) for both src/dst norms; mirrored here.
    """
    in_deg_dst = jnp.clip(adj.sum(axis=2, keepdims=True), 1.0, None)   # [R, N_dst, 1]
    out_deg_src = jnp.clip(adj.sum(axis=1, keepdims=True), 1.0, None)  # [R, 1, N_src]
    return adj * (in_deg_dst ** -0.5) * (out_deg_src ** -0.5)


def rgcn_forward(blocks, inputs, params):
    """Two-layer RGCN forward (conv1 -> relu -> conv2).

    Each layer is one pallas_call; for very small graphs the two layers could be fused into
    a single call (keeping h in VMEM scratch) to save one HBM round trip.
    """
    a1, a2 = blocks  # normalized adjacencies of blocks[0], blocks[1]
    h = rgcn_layer(a1, inputs, params["w1"], params["b1"], apply_relu=True)
    out = rgcn_layer(a2, h, params["w2"], params["b2"], apply_relu=False)
    return out


def rgcn_reference(blocks, inputs, params):
    """Pure-JAX f32 reference of the same math (for validation)."""
    a1, a2 = blocks
    hp = jax.lax.Precision.HIGHEST
    h = jnp.einsum("rds,sf,rfo->do", a1, inputs, params["w1"], precision=hp) + params["b1"].sum(0)
    h = jnp.maximum(h, 0.0)
    out = jnp.einsum("rds,sf,rfo->do", a2, h, params["w2"], precision=hp) + params["b2"].sum(0)
    return out


def _xavier_uniform(key, shape):
    fan_in, fan_out = shape[-2], shape[-1]
    bound = (6.0 / (fan_in + fan_out)) ** 0.5
    return jax.random.uniform(key, shape, jnp.float32, -bound, bound)


if __name__ == "__main__":
    key = jax.random.PRNGKey(0)
    R = 3                     # number of relation names
    N0, N1, N2 = 16, 12, 8    # src of block0, dst of block0 / src of block1, dst of block1
    in_feats, hid_feats, out_feats = 16, 32, 8

    k_a1, k_a2, k_x, k_w1, k_w2, k_b1, k_b2 = jax.random.split(key, 7)

    # Deterministic random dense block adjacencies (binary), then GraphConv 'both' norm.
    adj1 = jax.random.bernoulli(k_a1, 0.3, (R, N1, N0)).astype(jnp.float32)
    adj2 = jax.random.bernoulli(k_a2, 0.3, (R, N2, N1)).astype(jnp.float32)
    blocks = (normalize_adj(adj1), normalize_adj(adj2))

    inputs = jax.random.normal(k_x, (N0, in_feats), jnp.float32)

    params = {
        "w1": _xavier_uniform(k_w1, (R, in_feats, hid_feats)),
        "b1": 0.1 * jax.random.normal(k_b1, (R, hid_feats), jnp.float32),
        "w2": _xavier_uniform(k_w2, (R, hid_feats, out_feats)),
        "b2": 0.1 * jax.random.normal(k_b2, (R, out_feats), jnp.float32),
    }

    out = rgcn_forward(blocks, inputs, params)
    out = jax.block_until_ready(out)

    ref = rgcn_reference(blocks, inputs, params)
    assert out.shape == (N2, out_feats)
    # bf16 MXU operands (f32 accumulation) vs an f32 reference -> loosened tolerance.
    assert jnp.allclose(out, ref, atol=5e-2, rtol=5e-2), "mismatch vs pure-JAX reference"

    print("KERNEL_OK")
</pallas_src>

<mosaic_0001>
module attributes {stable_mosaic.version = 11 : i64} {
  func.func @_rgcn_layer_kernel(%arg0: i32, %arg1: i32, %arg2: memref<1x16x128xbf16, #tpu.memory_space<vmem>>, %arg3: memref<128x128xbf16, #tpu.memory_space<vmem>>, %arg4: memref<1x128x128xbf16, #tpu.memory_space<vmem>>, %arg5: memref<1x128xf32, #tpu.memory_space<vmem>>, %arg6: memref<16x128xf32, #tpu.memory_space<vmem>>) attributes {dimension_semantics = [#tpu.dimension_semantics<parallel>, #tpu.dimension_semantics<arbitrary>], iteration_bounds = array<i64: 1, 3>, scalar_prefetch = 0 : i64, scratch_operands = 0 : i64, tpu.core_type = #tpu.core_type<tc>, window_params = [{transform_indices = @transform_0, window_bounds = array<i64: 1, 16, 128>}, {pipeline_mode = #tpu.pipeline_mode<synchronous>, transform_indices = @transform_1, window_bounds = array<i64: 128, 128>}, {transform_indices = @transform_2, window_bounds = array<i64: 1, 128, 128>}, {pipeline_mode = #tpu.pipeline_mode<synchronous>, transform_indices = @transform_3, window_bounds = array<i64: 1, 128>}, {transform_indices = @transform_4, window_bounds = array<i64: 16, 128>}]} {
    %c0_i32 = arith.constant 0 : i32
    %0 = arith.cmpi eq, %arg1, %c0_i32 : i32
    %1 = arith.extui %0 : i1 to i32
    %c0_i32_0 = arith.constant 0 : i32
    %2 = arith.cmpi ne, %1, %c0_i32_0 : i32
    scf.if %2 {
      %cst_14 = arith.constant 0.000000e+00 : f32
      %17 = vector.broadcast %cst_14 : f32 to vector<16x128xf32>
      %c0_15 = arith.constant 0 : index
      %c0_16 = arith.constant 0 : index
      %18 = vector.load %arg6[%c0_15, %c0_16] : memref<16x128xf32, #tpu.memory_space<vmem>>, vector<16x128xf32>
      tpu.vector_store %arg6[%c0_15, %c0_16], %17 {strides = array<i32>} : memref<16x128xf32, #tpu.memory_space<vmem>>, vector<16x128xf32>,
    } else {
    }
    %c0 = arith.constant 0 : index
    %c0_1 = arith.constant 0 : index
    %3 = vector.load %arg3[%c0, %c0_1] : memref<128x128xbf16, #tpu.memory_space<vmem>>, vector<128x128xbf16>
    %c0_2 = arith.constant 0 : index
    %c0_3 = arith.constant 0 : index
    %c0_4 = arith.constant 0 : index
    %4 = vector.load %arg4[%c0_2, %c0_3, %c0_4] : memref<1x128x128xbf16, #tpu.memory_space<vmem>>, vector<1x128x128xbf16>
    %5 = vector.shape_cast %4 : vector<1x128x128xbf16> to vector<128x128xbf16>
    %cst = arith.constant dense<0.000000e+00> : vector<128x128xf32>
    %6 = tpu.matmul %3, %5, %cst {dimension_numbers = #tpu.dot_dimension_numbers<[1], [0], [0], [1], [0, 0, 1, 1], [], []>} : vector<128x128xbf16>, vector<128x128xbf16>, vector<128x128xf32> -> vector<128x128xf32>
    %c0_5 = arith.constant 0 : index
    %c0_6 = arith.constant 0 : index
    %c0_7 = arith.constant 0 : index
    %7 = vector.load %arg2[%c0_5, %c0_6, %c0_7] : memref<1x16x128xbf16, #tpu.memory_space<vmem>>, vector<1x16x128xbf16>
    %8 = vector.shape_cast %7 : vector<1x16x128xbf16> to vector<16x128xbf16>
    %9 = arith.truncf %6 : vector<128x128xf32> to vector<128x128xbf16>
    %cst_8 = arith.constant dense<0.000000e+00> : vector<16x128xf32>
    %10 = tpu.matmul %8, %9, %cst_8 {dimension_numbers = #tpu.dot_dimension_numbers<[1], [0], [0], [1], [0, 0, 1, 1], [], []>} : vector<16x128xbf16>, vector<128x128xbf16>, vector<16x128xf32> -> vector<16x128xf32>
    %c0_9 = arith.constant 0 : index
    %c0_10 = arith.constant 0 : index
    %11 = vector.load %arg6[%c0_9, %c0_10] : memref<16x128xf32, #tpu.memory_space<vmem>>, vector<16x128xf32>
    %12 = arith.addf %11, %10 : vector<16x128xf32>
    %c0_11 = arith.constant 0 : index
    %c0_12 = arith.constant 0 : index
    %13 = vector.load %arg6[%c0_11, %c0_12] : memref<16x128xf32, #tpu.memory_space<vmem>>, vector<16x128xf32>
    tpu.vector_store %arg6[%c0_11, %c0_12], %12 {strides = array<i32>} : memref<16x128xf32, #tpu.memory_space<vmem>>, vector<16x128xf32>,
    %c2_i32 = arith.constant 2 : i32
    %14 = arith.cmpi eq, %arg1, %c2_i32 : i32
    %15 = arith.extui %14 : i1 to i32
    %c0_i32_13 = arith.constant 0 : i32
    %16 = arith.cmpi ne, %15, %c0_i32_13 : i32
    scf.if %16 {
      %c0_14 = arith.constant 0 : index
      %c0_15 = arith.constant 0 : index
      %17 = vector.load %arg6[%c0_14, %c0_15] : memref<16x128xf32, #tpu.memory_space<vmem>>, vector<16x128xf32>
      %c0_16 = arith.constant 0 : index
      %c0_17 = arith.constant 0 : index
      %18 = vector.load %arg5[%c0_16, %c0_17] : memref<1x128xf32, #tpu.memory_space<vmem>>, vector<1x128xf32>
      %19 = vector.broadcast %18 : vector<1x128xf32> to vector<16x128xf32>
      %20 = arith.addf %17, %19 : vector<16x128xf32>
      %cst_18 = arith.constant 0.000000e+00 : f32
      %21 = vector.broadcast %cst_18 : f32 to vector<16x128xf32>
      %22 = arith.maximumf %20, %21 : vector<16x128xf32>
      %c0_19 = arith.constant 0 : index
      %c0_20 = arith.constant 0 : index
      %23 = vector.load %arg6[%c0_19, %c0_20] : memref<16x128xf32, #tpu.memory_space<vmem>>, vector<16x128xf32>
      tpu.vector_store %arg6[%c0_19, %c0_20], %22 {strides = array<i32>} : memref<16x128xf32, #tpu.memory_space<vmem>>, vector<16x128xf32>,
    } else {
    }
    return
  }
  func.func @transform_0(%arg0: i32, %arg1: i32) -> (i32, i32, i32) {
    %c0_i32 = arith.constant 0 : i32
    %c0_i32_0 = arith.constant 0 : i32
    return %arg1, %arg0, %c0_i32 : i32, i32, i32
  }
  func.func @transform_1(%arg0: i32, %arg1: i32) -> (i32, i32) {
    %c0_i32 = arith.constant 0 : i32
    %c0_i32_0 = arith.constant 0 : i32
    %c0_i32_1 = arith.constant 0 : i32
    return %c0_i32, %c0_i32_0 : i32, i32
  }
  func.func @transform_2(%arg0: i32, %arg1: i32) -> (i32, i32, i32) {
    %c0_i32 = arith.constant 0 : i32
    %c0_i32_0 = arith.constant 0 : i32
    %c0_i32_1 = arith.constant 0 : i32
    return %arg1, %c0_i32, %c0_i32_0 : i32, i32, i32
  }
  func.func @transform_3(%arg0: i32, %arg1: i32) -> (i32, i32) {
    %c0_i32 = arith.constant 0 : i32
    %c0_i32_0 = arith.constant 0 : i32
    %c0_i32_1 = arith.constant 0 : i32
    return %c0_i32, %c0_i32_0 : i32, i32
  }
  func.func @transform_4(%arg0: i32, %arg1: i32) -> (i32, i32) {
    %c0_i32 = arith.constant 0 : i32
    %c0_i32_0 = arith.constant 0 : i32
    return %arg0, %c0_i32 : i32, i32
  }
}

</mosaic_0001>

<bundles_post_ra>
// kernel: tpu_custom_call.1
= control target key start
LH: loop header
LB: loop body
LE: loop exit
PB: predicated region body
PF: predicated region fallthrough
CT: control target
= control target key end

     0   :  { %9 = vsyncpa [#allocation3], 0  ;;  %s1393_s0 = inlined_call_operand.hbm [shape: bf16[3,16,128], index: 0, kind: input, shape index: {}]   ;;  %s1394_s1 = inlined_call_operand.hbm [shape: bf16[128,128], index: 1, kind: input, shape index: {}]   ;;  %s1395_s2 = inlined_call_operand.hbm [shape: bf16[3,128,128], index: 2, kind: input, shape index: {}]   ;;  %s1396_s3 = inlined_call_operand.vmem [shape: f32[1,128], index: 3, kind: input, shape index: {}]   ;;  %s1397_s4 = inlined_call_operand.hbm [shape: f32[16,128], index: 4, kind: output, shape index: {}]  }
   0x1   :  { %11 = vsyncpa [#allocation3 + $0x1], 0 }
   0x2   :  { %12 = vsyncpa [#allocation6], 0 }
   0x3   :  { %13 = vsyncpa [#allocation4], 0  ;;  %s1132_s15 = smov 0   ;;  %s1134_s16 = smov 0  }
   0x4   :  { %s1136_s17 = smov 0   ;;  %s1138_s18 = smov 0  }
   0x5   :  { %s1140_s19 = smov 0   ;;  %s1142_s20 = smov 0  }
   0x6 LB: > { %s28_s21 = sadd.s32 1, %s1090_s19  ;;  %s40_s22 = sadd.s32 1, %s1082_s17  ;;  %s1094_s20 = sphi %s1142_s20, %s19_s20   ;;  %s1090_s19 = sphi %s1140_s19, %s1414_s19   ;;  %s1086_s18 = sphi %s1138_s18, %s1413_s18   ;;  %s1082_s17 = sphi %s1136_s17, %s1412_s17   ;;  %s1078_s16 = sphi %s1134_s16, %s1411_s16   ;;  %s1074_s15 = sphi %s1132_s15, %s1410_s15  }
   0x7   : > { %p29_p0 = scmp.ge.s32.totalorder %s28_s21, 3  ;;  %p47_p1 = scmp.ne.s32.totalorder %s1082_s17, %s1078_s16 }
   0x8   : > { %p48_p2 = scmp.eq.s32.totalorder %s1094_s20, 0  ;;  %p840_p5 = scmp.lt.s32.totalorder %s1094_s20, 3 }
   0x9   : > { %s1416_s21 = smov (%p29_p0, %s28_s21), 0  ;;  %s187_s25 = sand.u32 1, %s1094_s20  }
   0xa   : > { %p1169_p3 = por %p48_p2, %p47_p1  ;;  %s35_s24 = ssub.s32 %s1090_s19, %s1416_s21 }
   0xb   : > { %p38_p4 = scmp.eq.s32.totalorder %s35_s24, 0  ;;  %s189_s26 = sand.u32 1, %s1082_s17  }
   0xc   : > { %s703_s28 = sshll.u32 %s189_s26, 3  ;;  %s737_s29 = sshll.u32 %s1090_s19, 7 }
   0xd   : > { %s1179_s27 = scalar_select %p38_p4, %s1082_s17, %s40_s22  }
   0xe   : > { %s1185_s6 = scalar_lea.hbm %s1393_s0, %s737_s29  ;;  %s191_s7 = scalar_lea.vmem [#allocation2], %s703_s28 }
   0xf   : > { %s200_s8 = sshll.u32 %s191_s7, 4  ;;  %p1191_p6 = pnand %p840_p5, %p1169_p3  ;;  %s1187_s8 = int_to_ptr.vmem [resolvable:$true] %s200_s8 }
  0x10   : > { %s1195_s10 = sshll.u32 %s189_s26, 6  ;;  %s1197_s11 = scalar_lea.sflag [#allocation3], %s187_s25 }
  0x11   : > { %s918_s12 = scalar_lea.hbm %s1185_s6, 128  ;;  %p920_p8 = pneg %p1191_p6 }
  0x12   : > { %p919_p7 = scmp.ne.s32.totalorder %s1185_s6, %s918_s12  ;;  %s923_s22 = scalar_lea.hbm %s1393_s0, 384 }
  0x13   : > { %p924_p11 = scmp.lt.u32.totalorder %s1185_s6, %s1393_s0  ;;  %p925_p12 = scmp.lt.u32.totalorder %s923_s22, %s918_s12 }
  0x14   : > { %p921_p9 = pnand %p920_p8, %p919_p7  ;;  %p927_p0 = scmp.lt.u32.totalorder %s918_s12, %s1185_s6 }
  0x15   : > { %p926_p13 = por %p925_p12, %p924_p11 }
  0x16   : > { %p922_p10 = pneg %p921_p9 }
  0x17   : > { %p928_p1 = por %p927_p0, %p926_p13 }
  0x19   : > { %p929_p2 = pnand %p928_p1, %p922_p10 }
  0x1b   : > { %932 = shalt.err (!%p929_p2)
}
  0x1c   : > { %s933_s25 = scalar_lea.vmem %s1187_s8, 128  ;;  %s1096_s26 = smov [#allocation2]  }
  0x1d   : > { %p934_p3 = scmp.ne.s32.totalorder %s1187_s8, %s933_s25  ;;  %s938_s28 = sshll.u32 %s1096_s26, 4  ;;  %s939_s28 = int_to_ptr.vmem [resolvable:$false] %s938_s28 }
  0x1e   : > { %s940_s29 = scalar_lea.vmem %s939_s28, 256  ;;  %p941_p7 = scmp.lt.s32.totalorder %s1187_s8, %s939_s28 }
  0x1f   : > { %p936_p4 = pnand %p934_p3, %p920_p8  ;;  %p942_p9 = scmp.lt.s32.totalorder %s940_s29, %s933_s25 }
  0x21   : > { %p937_p5 = pneg %p936_p4  ;;  %p943_p11 = por %p942_p9, %p941_p7 }
  0x23   : > { %p944_p12 = pnand %p943_p11, %p937_p5 }
  0x25   : > { %947 = shalt.err (!%p944_p12)
}
  0x26   : > { %s1097_s30 = smov 64   ;;  %s1098_s5 = smov 4  }
  0x27   : > { %835 = dma.hbm_to_vmem [thread:$0]  (!%p1191_p6), %s1185_s6, 128, %s1187_s8, %s1197_s11, %s1097_s30, %s1097_s30, %s1098_s5  }
  0x28   : > { %s1229_s7 = sadd.s32 4294967295, %s1094_s20   ;;  %p53_p10 = scmp.ne.s32.totalorder %s1078_s16, %s1074_s15 }
  0x29   : > { %p1398_p13 = scmp.eq.s32.totalorder %s1229_s7, 0  ;;  %p700_p0 = scmp.ge.s32.totalorder %s1094_s20, 1 }
  0x2a   : > { %p158_p1 = scmp.lt.s32.totalorder %s1094_s20, 4  ;;  %s214_s13 = scalar_lea.vmem [#allocation7], %s1195_s10 }
  0x2b   : > { %p1238_p2 = por %p1398_p13, %p53_p10  ;;  %s221_s14 = sshll.u32 %s214_s13, 4  ;;  %s1255_s14 = int_to_ptr.vmem [resolvable:$true] %s221_s14 }
  0x2c   : > { %p1243_p3 = pnand %p700_p0, %p158_p1  ;;  %s1099_s6 = smov [#allocation5]  }
  0x2d   : > { %s1403_s12 = scalar_select %p1238_p2, 1, 0 }
  0x2e   : > { %s1404_s22 = scalar_select %p1243_p3, 1, 0 }
  0x2f   : > { %s170_s8 = sshll.u32 %s1099_s6, 4  ;;  %s738_s23 = sshll.u32 %s1090_s19, 10  ;;  %s1257_s8 = int_to_ptr.vmem [resolvable:$true] %s170_s8 }
  0x30   : > { %p828_p4 = pneg %p1243_p3  ;;  %s1253_s25 = scalar_lea.hbm %s1395_s2, %s738_s23 }
  0x31   : > { %s948_s26 = scalar_lea.hbm %s1253_s25, 1024  ;;  %s953_s13 = scalar_lea.hbm %s1395_s2, 3072 }
  0x32   : > { %p1261_p5 = pnand %p828_p4, %p1398_p13  ;;  %p949_p7 = scmp.ne.s32.totalorder %s1253_s25, %s948_s26 }
  0x33   : > { %p954_p12 = scmp.lt.u32.totalorder %s1253_s25, %s1395_s2  ;;  %p955_p10 = scmp.lt.u32.totalorder %s953_s13, %s948_s26 }
  0x34   : > { %p951_p9 = pnand %p949_p7, %p920_p8  ;;  %p957_p1 = scmp.lt.u32.totalorder %s948_s26, %s1253_s25 }
  0x35   : > { %p956_p0 = por %p955_p10, %p954_p12 }
  0x36   : > { %p952_p11 = pneg %p951_p9 }
  0x37   : > { %p958_p4 = por %p957_p1, %p956_p0 }
  0x39   : > { %p959_p13 = pnand %p958_p4, %p952_p11 }
  0x3b   : > { %962 = shalt.err (!%p959_p13)
}
  0x3c   : > { %s963_s15 = scalar_lea.vmem %s1255_s14, 1024  ;;  %s1100_s24 = smov [#allocation7]  }
  0x3d   : > { %p964_p7 = scmp.ne.s32.totalorder %s1255_s14, %s963_s15  ;;  %s968_s28 = sshll.u32 %s1100_s24, 4  ;;  %s969_s28 = int_to_ptr.vmem [resolvable:$false] %s968_s28 }
  0x3e   : > { %s970_s29 = scalar_lea.vmem %s969_s28, 2048  ;;  %p971_p3 = scmp.lt.s32.totalorder %s1255_s14, %s969_s28 }
  0x3f   : > { %p966_p9 = pnand %p964_p7, %p920_p8  ;;  %p972_p12 = scmp.lt.s32.totalorder %s970_s29, %s963_s15 }
  0x41   : > { %p967_p2 = pneg %p966_p9  ;;  %p973_p10 = por %p972_p12, %p971_p3 }
  0x43   : > { %p974_p0 = pnand %p973_p10, %p967_p2 }
  0x45   : > { %977 = shalt.err (!%p974_p0)
}
  0x46   : > { %838 = dma.hbm_to_vmem [thread:$0]  (!%p1191_p6), %s1253_s25, 1024, %s1255_s14, %s1197_s11, %s1097_s30, %s1097_s30, %s1098_s5  }
  0x47   : > { %s978_s6 = scalar_lea.hbm %s1394_s1, 1024  ;;  %p980_p13 = pneg %p1261_p5 }
  0x48   : > { %p979_p8 = scmp.ne.s32.totalorder %s1394_s1, %s978_s6  ;;  %p985_p11 = scmp.lt.u32.totalorder %s978_s6, %s1394_s1 }
  0x4a   : > { %p981_p2 = pnand %p980_p13, %p979_p8 }
  0x4c   : > { %p982_p3 = pneg %p981_p2 }
  0x4e   : > { %p987_p1 = pnand %p985_p11, %p982_p3 }
  0x50   : > { %990 = shalt.err (!%p987_p1)
}
  0x51   : > { %s991_s11 = scalar_lea.vmem %s1257_s8, 1024  ;;  %p999_p9 = scmp.lt.s32.totalorder %s1257_s8, %s1257_s8 }
  0x52   : > { %p992_p6 = scmp.ne.s32.totalorder %s1257_s8, %s991_s11  ;;  %p1000_p12 = scmp.lt.s32.totalorder %s991_s11, %s991_s11 }
  0x54   : > { %p994_p4 = pnand %p992_p6, %p980_p13  ;;  %p1001_p10 = por %p1000_p12, %p999_p9 }
  0x56   : > { %p995_p7 = pneg %p994_p4 }
  0x58   : > { %p1002_p0 = pnand %p1001_p10, %p995_p7 }
  0x5a   : > { %1005 = shalt.err (!%p1002_p0)
}
  0x5b   : > { %831 = dma.hbm_to_vmem [thread:$0]  (!%p1261_p5), %s1394_s1, 1024, %s1257_s8, [#allocation6], %s1097_s30, %s1097_s30, %s1098_s5  }
  0x5c   : > { %p1406_p8 = scmp.ne.s32.totalorder %s1404_s22, 0 }
  0x5d   : > { %s235_s28 = sand.u32 (!%p1406_p8), 1, %s1229_s7   ;;  %s237_s29 = sand.u32 (!%p1406_p8), 1, %s1078_s16  }
  0x5e   : > { %233 = sbr.rel (%p1406_p8) target bundleno = 653 (0x28d), region = 36  ;;  %s1320_s26 = sshll.u32 (!%p1406_p8), %s237_s29, 3 }
  0x5f   : > { %s236_s10 = scalar_lea.sflag (!%p1406_p8), [#allocation3], %s235_s28  ;;  %s239_s13 = scalar_lea.vmem (!%p1406_p8), [#allocation2], %s1320_s26 }
  0x60   : > { %p1407_p13 = scmp.ne.s32.totalorder (!%p1406_p8), %s1403_s12, 0 }
  0x65   : > { %1057 = dma.done.wait (%p1407_p13), %s236_s10, 128  }
  0x66   : > { %1059 = vsyncadd (%p1407_p13), %s236_s10, 4294967168  ;;  %p1408_p5 = scmp.eq.s32.totalorder %s1229_s7, 0 }
  0x68   : > { %1061 = dma.done.wait (%p1408_p5), [#allocation6], 1024   ;;  %p1409_p2 = pmov %p1408_p5 }
  0x69   : > { %s712_s30 = sshll.u32 %s237_s29, 6 }
  0x6a   : > { %1063 = vsyncadd (%p1409_p2), [#allocation6], 4294966272  ;;  %s1331_s5 = scalar_lea.vmem [#allocation7], %s712_s30 }
  0x6b   : > { %1065 = dma.done.wait (%p1407_p13), %s236_s10, 1024  }
  0x6c   : > { %1067 = vsyncadd (%p1407_p13), %s236_s10, 4294966272  ;;  %p713_p3 = scmp.ne.s32.totalorder %s1086_s18, 0 }
  0x6d   : > { %v1101_v0 = vmov (!%p713_p3), 0.0  }
  0x6e   : > { %283 = sbr.rel (%p713_p3) target bundleno = 117 (0x75), region = 52  ;;  %284 = vst [vmem:[#allocation8] sm:$0xff] (!%p713_p3), %v1101_v0  ;;  %285 = vst [vmem:[#allocation8 + $0x8] sm:$0xff] (!%p713_p3), %v1101_v0 }
  0x75 PF: > { %v901_v1 = vld [vmem:[%s1331_s5] sm:$0xff]   ;;  %v902_v2 = vld [vmem:[%s1331_s5 + $0x8] sm:$0xff]   ;;  %v903_v3 = vld [vmem:[%s1331_s5 + $0x10] sm:$0xff]   ;;  %v1102_v17 = vmov 0.0   ;;  %vm1103_vm0 = vmmov 0   ;;  %p731_p11 = scmp.ne.s32.totalorder %s1086_s18, 2 }
  0x76   : > { %764 = vmatprep.subr.bf16.mxu0 %v901_v1  ;;  %v904_v4 = vld [vmem:[%s1331_s5 + $0x18] sm:$0xff]   ;;  %v909_v5 = vld [vmem:[#allocation5] sm:$0xff]   ;;  %v906_v7 = vld [vmem:[%s1331_s5 + $0x28] sm:$0xff]   ;;  %796 = vmatprep.subr.bf16.mxu1 %v1102_v17 }
  0x77   : > { %765 = vmatpush3.bf16.msra.mxu0 %v901_v1  ;;  %780 = vmatprep.mubr.bf16.mxu0 %v909_v5  ;;  %v905_v6 = vld [vmem:[%s1331_s5 + $0x20] sm:$0xff]   ;;  %v907_v8 = vld [vmem:[%s1331_s5 + $0x30] sm:$0xff]   ;;  %v908_v9 = vld [vmem:[%s1331_s5 + $0x38] sm:$0xff]  }
  0x78   : > { %766 = vmatprep.subr.bf16.mxu0 %v902_v2  ;;  %v910_v10 = vld [vmem:[#allocation5 + $0x8] sm:$0xff]   ;;  %v911_v11 = vld [vmem:[#allocation5 + $0x10] sm:$0xff]   ;;  %v912_v12 = vld [vmem:[#allocation5 + $0x18] sm:$0xff]   ;;  %812 = vmatprep.mubr.msk.bf16.mxu1 %vm1103_vm0, %v1102_v17 }
  0x79   : > { %v913_v13 = vld [vmem:[#allocation5 + $0x20] sm:$0xff]   ;;  %v914_v14 = vld [vmem:[#allocation5 + $0x28] sm:$0xff]   ;;  %v915_v15 = vld [vmem:[#allocation5 + $0x30] sm:$0xff]  }
  0x7a   : > { %v916_v16 = vld [vmem:[#allocation5 + $0x38] sm:$0xff]   ;;  %v568_v43 = vld [vmem:[#allocation8] sm:$0xff]  ;;  %v569_v45 = vld [vmem:[#allocation8 + $0x8] sm:$0xff] }
  0x7b   : > { %767 = vmatpush3.bf16.msra.mxu0 %v902_v2  ;;  %v917_v42 = vld [vmem:[%s239_s13] sm:$0xff]  }
  0x7c   : > { %768 = vmatprep.subr.bf16.mxu0 %v903_v3  ;;  %v732_v52 = vld [vmem:[%s1396_s3] ss:$0 sm:$0xff] (!%p731_p11) }
  0x7f   : > { %769 = vmatpush3.bf16.msra.mxu0 %v903_v3 }
  0x80   : > { %770 = vmatprep.subr.bf16.mxu0 %v904_v4 }
  0x83   : > { %771 = vmatpush3.bf16.msra.mxu0 %v904_v4 }
  0x84   : > { %772 = vmatprep.subr.bf16.mxu0 %v905_v6 }
  0x87   : > { %773 = vmatpush3.bf16.msra.mxu0 %v905_v6 }
  0x88   : > { %774 = vmatprep.subr.bf16.mxu0 %v906_v7 }
  0x8b   : > { %775 = vmatpush3.bf16.msra.mxu0 %v906_v7 }
  0x8c   : > { %776 = vmatprep.subr.bf16.mxu0 %v907_v8 }
  0x8f   : > { %777 = vmatpush3.bf16.msra.mxu0 %v907_v8 }
  0x90   : > { %778 = vmatprep.subr.bf16.mxu0 %v908_v9 }
  0x93   : > { %779 = vmatpush3.bf16.msra.mxu0 %v908_v9 }
  0x96   : > { %781 = vmatmul.mubr.bf16.vlgmr.msra.gmra.mrb[0].mxu0 %v910_v10 }
  0x97   : > { %784 = vmatprep.mubr.bf16.mxu0 %v911_v11 }
  0x9e   : > { %785 = vmatmul.mubr.bf16.gmra.mrb[4].mxu0 %v912_v12 }
  0x9f   : > { %788 = vmatprep.mubr.bf16.mxu0 %v913_v13 }
  0xa6   : > { %789 = vmatmul.mubr.bf16.gmra.mrb[8].mxu0 %v914_v14 }
  0xa7   : > { %792 = vmatprep.mubr.bf16.mxu0 %v915_v15 }
  0xae   : > { %793 = vmatmul.mubr.bf16.gmra.mrb[12].mxu0 %v916_v16 }
 0x169   : > { %v782_v18 = vpop.f32.mrb[0].mxu0 }
 0x16a   : > { %v448_v19 = vpop.f32.mrb[1].mxu0 }
 0x16b   : > { %v783_v20 = vpop.f32.mrb[2].mxu0 }
 0x16c   : > { %v514_v21 = vpack.c.bf16 %v783_v20, %v782_v18  ;;  %v451_v22 = vpop.f32.mrb[3].mxu0 }
 0x16d   : > { %v513_v23 = vpack.c.bf16 %v451_v22, %v448_v19 }
 0x16f   : > { %797 = vmatpush3.bf16.msra.mxu1 %v513_v23 }
 0x170   : > { %798 = vmatprep.subr.bf16.mxu1 %v1102_v17 }
 0x171   : > { %v786_v24 = vpop.f32.mrb[4].mxu0 }
 0x172   : > { %v464_v25 = vpop.f32.mrb[5].mxu0 }
 0x173   : > { %v787_v26 = vpop.f32.mrb[6].mxu0  ;;  %799 = vmatpush3.bf16.msra.mxu1 %v514_v21 }
 0x174   : > { %v516_v27 = vpack.c.bf16 %v787_v26, %v786_v24  ;;  %v467_v28 = vpop.f32.mrb[7].mxu0  ;;  %800 = vmatprep.subr.bf16.mxu1 %v1102_v17 }
 0x175   : > { %v515_v29 = vpack.c.bf16 %v467_v28, %v464_v25 }
 0x177   : > { %801 = vmatpush3.bf16.msra.mxu1 %v515_v29 }
 0x178   : > { %802 = vmatprep.subr.bf16.mxu1 %v1102_v17 }
 0x179   : > { %v790_v30 = vpop.f32.mrb[8].mxu0 }
 0x17a   : > { %v480_v31 = vpop.f32.mrb[9].mxu0 }
 0x17b   : > { %v791_v32 = vpop.f32.mrb[10].mxu0  ;;  %803 = vmatpush3.bf16.msra.mxu1 %v516_v27 }
 0x17c   : > { %v518_v33 = vpack.c.bf16 %v791_v32, %v790_v30  ;;  %v483_v34 = vpop.f32.mrb[11].mxu0  ;;  %804 = vmatprep.subr.bf16.mxu1 %v1102_v17 }
 0x17d   : > { %v517_v35 = vpack.c.bf16 %v483_v34, %v480_v31 }
 0x17f   : > { %805 = vmatpush3.bf16.msra.mxu1 %v517_v35 }
 0x180   : > { %806 = vmatprep.subr.bf16.mxu1 %v1102_v17 }
 0x181   : > { %v794_v36 = vpop.f32.mrb[12].mxu0 }
 0x182   : > { %v496_v37 = vpop.f32.mrb[13].mxu0 }
 0x183   : > { %v795_v38 = vpop.f32.mrb[14].mxu0  ;;  %807 = vmatpush3.bf16.msra.mxu1 %v518_v33 }
 0x184   : > { %v520_v39 = vpack.c.bf16 %v795_v38, %v794_v36  ;;  %v499_v40 = vpop.f32.mrb[15].mxu0  ;;  %808 = vmatprep.subr.bf16.mxu1 %v1102_v17 }
 0x185   : > { %v519_v41 = vpack.c.bf16 %v499_v40, %v496_v37 }
 0x187   : > { %809 = vmatpush3.bf16.msra.mxu1 %v519_v41 }
 0x188   : > { %810 = vmatprep.subr.bf16.mxu1 %v1102_v17 }
 0x18b   : > { %811 = vmatpush3.bf16.msra.mxu1 %v520_v39 }
 0x18e   : > { %813 = vmatmul.mubr.bf16.vlgmr.msra.gmra.mrb[0].mxu1 %v917_v42 }
 0x260   : > { %577 = sbr.rel (%p731_p11) target bundleno = 627 (0x273), region = 56 }
 0x261   : > { %v561_v44 = vpop.f32.mrb[0].mxu1 }
 0x262   : > { %v570_v46 = vadd.f32 %v568_v43, %v561_v44  ;;  %v814_v47 = vpop.f32.mrb[1].mxu1 }
 0x263   : > { %v564_v48 = vpop.f32.mrb[2].mxu1 }
 0x264   : > { %572 = vst [vmem:[#allocation8] sm:$0xff] %v570_v46  ;;  %v571_v49 = vadd.f32 %v569_v45, %v564_v48  ;;  %v815_v50 = vpop.f32.mrb[3].mxu1 }
 0x266   : > { %573 = vst [vmem:[#allocation8 + $0x8] sm:$0xff] %v571_v49 }
 0x26b   : > { %v578_v51 = vld [vmem:[#allocation8] sm:$0xff] }
 0x26c   : > { %v587_v54 = vadd.f32 %v732_v52, %v578_v51 }
 0x26d   : > { %v579_v53 = vld [vmem:[#allocation8 + $0x8] sm:$0xff] }
 0x26e   : > { %v588_v55 = vadd.f32 %v732_v52, %v579_v53  ;;  %v589_v56 = vmax.f32 %v587_v54, 0.0 }
 0x270   : > { %v590_v57 = vmax.f32 %v588_v55, 0.0  ;;  %591 = vst [vmem:[#allocation8] sm:$0xff] %v589_v56 }
 0x272   : > { %592 = vst [vmem:[#allocation8 + $0x8] sm:$0xff] %v590_v57 }
 0x273 PF: > { %p842_p1 = scmp.eq.s32.totalorder %s1229_s7, 2  ;;  %s1104_s8 = smov [#allocation8]  }
 0x274   : > { %s602_s6 = sshll.u32 %s1104_s8, 4  ;;  %s603_s6 = int_to_ptr.vmem [resolvable:$true] %s602_s6 }
 0x275   : > { %s1006_s18 = scalar_lea.vmem %s603_s6, 256  ;;  %p1013_p9 = scmp.lt.s32.totalorder %s603_s6, %s603_s6 }
 0x276   : > { %p1007_p6 = scmp.ne.s32.totalorder %s603_s6, %s1006_s18  ;;  %p1014_p12 = scmp.lt.s32.totalorder %s1006_s18, %s1006_s18 }
 0x278   : > { %p1008_p4 = pnand %p1007_p6, %p842_p1  ;;  %p1015_p10 = por %p1014_p12, %p1013_p9 }
 0x27a   : > { %p1009_p7 = pneg %p1008_p4 }
 0x27c   : > { %p1016_p0 = pnand %p1015_p10, %p1009_p7 }
 0x27e   : > { %1019 = shalt.err (!%p1016_p0)
}
 0x27f   : > { %s1020_s9 = scalar_lea.hbm %s1397_s4, 256 }
 0x280   : > { %p1021_p8 = scmp.ne.s32.totalorder %s1397_s4, %s1020_s9  ;;  %p1026_p2 = scmp.lt.u32.totalorder %s1020_s9, %s1397_s4 }
 0x282   : > { %p1022_p13 = pnand %p1021_p8, %p842_p1 }
 0x284   : > { %p1023_p5 = pneg %p1022_p13 }
 0x286   : > { %p1028_p3 = pnand %p1026_p2, %p1023_p5 }
 0x288   : > { %1031 = shalt.err (!%p1028_p3)
}
 0x289   : > { %s1105_s28 = smov 128   ;;  %s1106_s29 = smov 8  }
 0x28a   : > { %825 = dma.vmem_to_hbm [thread:$0]  (%p842_p1), %s603_s6, 256, %s1397_s4, [#allocation4], %s1105_s28, %s1105_s28, %s1106_s29  }
 0x28b   : > { %1069 = dma.done.wait (%p842_p1), [#allocation4], 256  }
 0x28c   : > { %1071 = vsyncadd (%p842_p1), [#allocation4], 4294967040 }
 0x28d PF: > { %s19_s20 = sadd.s32 1, %s1094_s20   ;;  %s1410_s15 = smov %s1078_s16 }
 0x28e   : > { %p16_p11 = scmp.ge.s32.totalorder %s19_s20, 5   ;;  %s1411_s16 = smov %s1082_s17 }
 0x28f   : > { %s1412_s17 = smov %s1179_s27  ;;  %s1413_s18 = smov %s1090_s19 }
 0x290   : > { %s1414_s19 = smov %s1416_s21  ;;  %18 = sbr.rel (!%p16_p11) target bundleno = 6 (0x6), region = 97 }
 0x297   :  { %618 = vsyncpa [#allocation3], 1 }
 0x298   :  { %620 = vsyncpa [#allocation3 + $0x1], 1 }
 0x299   :  { %621 = vsyncpa [#allocation6], 1 }
 0x29a   :  { %622 = vsyncpa [#allocation4], 1 }
 0x29b   :  { %624 = vsyncpa [#allocation4 + $0x1], 1 }

</bundles_post_ra>
